<compile_context>
chip_gen: v7x
topology: tpu7x:2x2x1
jax: 0.10.0
libtpu: 0.0.40
codegen_flags: <defaults>
</compile_context>

<pallas_src>
import jax
import jax.numpy as jnp
from jax.experimental import pallas as pl
from jax.experimental.pallas import tpu as pltpu

IN_FEATURES = 187
OUT_FEATURES = 3


def _mlp_kernel(x_ref, w1_ref, b1_ref, w2_ref, b2_ref, w3_ref, b3_ref,
                w4_ref, b4_ref, out_ref):
    # Whole parameter set (~100 KB in bf16/f32) lives in VMEM for every grid
    # step; only the (tile_b, 187) f32 activation tile and (tile_b, 3) f32
    # output tile stream through the pipeline.
    x = x_ref[...].astype(w1_ref.dtype)                          # f32 -> bf16 in-kernel

    # Layer 1: (tile_b, 187) @ (187, 256) -> f32 accumulator
    h1 = jnp.dot(x, w1_ref[...], preferred_element_type=jnp.float32) + b1_ref[...]
    h1 = jnp.maximum(h1, 0.0)

    # Layer 2: cast only the matmul input down to bf16; bias/ReLU stay f32.
    h2 = jnp.dot(h1.astype(w2_ref.dtype), w2_ref[...],
                 preferred_element_type=jnp.float32) + b2_ref[...]
    h2 = jnp.maximum(h2, 0.0)

    # Layer 3
    h3 = jnp.dot(h2.astype(w3_ref.dtype), w3_ref[...],
                 preferred_element_type=jnp.float32) + b3_ref[...]
    h3 = jnp.maximum(h3, 0.0)

    # Layer 4: 3-wide logits, stored directly (masked vst is negligible).
    logits = jnp.dot(h3.astype(w4_ref.dtype), w4_ref[...],
                     preferred_element_type=jnp.float32) + b4_ref[...]
    out_ref[...] = logits.astype(out_ref.dtype)


def _round_up(x, m):
    return ((x + m - 1) // m) * m


def nn_text_forward(x, params, *, tile_b=2048, compute_dtype=jnp.bfloat16):
    """x: (B, 187) float32 (already flattened). Returns (B, 3) f32 logits."""
    (w1, b1), (w2, b2), (w3, b3), (w4, b4) = params
    B, f_in = x.shape
    assert f_in == IN_FEATURES

    # Batch tile selection:
    #   * tiny batches: a single full-extent block (block dim == array dim).
    #   * otherwise: multiple of 16 rows (bf16 sublane pack), capped at tile_b,
    #     and small enough that there are >= 2 grid steps (v7x megacore).
    if B <= 16:
        tile_b = B
    else:
        tile_b = max(16, min(tile_b, _round_up(pl.cdiv(B, 2), 16)))
    grid_b = pl.cdiv(B, tile_b)

    # Wrapper-side glue: one-time bf16 cast of the (tiny) weights only.
    w1c = w1.astype(compute_dtype)
    w2c = w2.astype(compute_dtype)
    w3c = w3.astype(compute_dtype)
    w4c = w4.astype(compute_dtype)

    const = lambda shape: pl.BlockSpec(shape, lambda i: (0, 0))

    flops = 2 * B * (IN_FEATURES * 256 + 256 * 64 + 64 * 32 + 32 * OUT_FEATURES)
    param_bytes = sum(int(a.size) * a.dtype.itemsize
                      for a in (w1c, b1, w2c, b2, w3c, b3, w4c, b4))
    bytes_accessed = (B * IN_FEATURES * 4          # x read (f32, straight from HBM)
                      + B * OUT_FEATURES * 4       # logits write (f32)
                      + param_bytes)

    out = pl.pallas_call(
        _mlp_kernel,
        out_shape=jax.ShapeDtypeStruct((B, OUT_FEATURES), jnp.float32),
        grid=(grid_b,),
        in_specs=[
            pl.BlockSpec((tile_b, IN_FEATURES), lambda i: (i, 0)),
            const(w1c.shape), const(b1.shape),
            const(w2c.shape), const(b2.shape),
            const(w3c.shape), const(b3.shape),
            const(w4c.shape), const(b4.shape),
        ],
        out_specs=pl.BlockSpec((tile_b, OUT_FEATURES), lambda i: (i, 0)),
        compiler_params=pltpu.CompilerParams(
            dimension_semantics=("parallel",),
            vmem_limit_bytes=32 * 1024 * 1024),
        cost_estimate=pl.CostEstimate(
            flops=flops, transcendentals=0, bytes_accessed=bytes_accessed),
    )(x, w1c, b1, w2c, b2, w3c, b3, w4c, b4)

    return out


def init_params(key):
    """Deterministic parameter init mimicking nn.Linear shapes.

    Weights are stored as (in_features, out_features) — the transpose of
    PyTorch's (out, in) layout — so the kernel does x @ W directly.
    """
    dims = [(187, 256), (256, 64), (64, 32), (32, 3)]
    params = []
    for (fan_in, fan_out) in dims:
        key, kw, kb = jax.random.split(key, 3)
        bound = 1.0 / jnp.sqrt(fan_in)  # PyTorch default uniform bound
        w = jax.random.uniform(kw, (fan_in, fan_out), jnp.float32, -bound, bound)
        b = jax.random.uniform(kb, (1, fan_out), jnp.float32, -bound, bound)
        params.append((w, b))
    return params


def reference_forward(x, params, compute_dtype=jnp.bfloat16):
    """Plain-JAX reference mirroring the kernel's numerics (bf16 matmuls, f32 acc)."""
    h = x.astype(compute_dtype)
    for i, (w, b) in enumerate(params):
        h = jnp.dot(h, w.astype(compute_dtype),
                    preferred_element_type=jnp.float32) + b
        if i < len(params) - 1:
            h = jnp.maximum(h, 0.0).astype(compute_dtype)
    return h


if __name__ == "__main__":
    key = jax.random.PRNGKey(0)
    key, kx = jax.random.split(key)

    # Input: the PyTorch module flattens trailing dims into 187 features, so
    # build x as (16, 1, 187) and flatten in plain JAX (glue), matching
    # nn.Flatten semantics.
    B = 16
    x_raw = jax.random.normal(kx, (B, 1, IN_FEATURES), jnp.float32)
    x = x_raw.reshape(x_raw.shape[0], -1)  # (16, 187)

    params = init_params(key)

    out = nn_text_forward(x, params)
    out = jax.block_until_ready(out)

    ref = reference_forward(x, params)
    assert out.shape == (B, OUT_FEATURES)
    assert jnp.allclose(out, ref, atol=1e-2, rtol=1e-2), "mismatch vs JAX reference"

    print("KERNEL_OK")
</pallas_src>

<mosaic_0001>
module attributes {stable_mosaic.version = 11 : i64} {
  func.func @_mlp_kernel(%arg0: i32, %arg1: memref<16x187xf32, #tpu.memory_space<vmem>>, %arg2: memref<187x256xbf16, #tpu.memory_space<vmem>>, %arg3: memref<1x256xf32, #tpu.memory_space<vmem>>, %arg4: memref<256x64xbf16, #tpu.memory_space<vmem>>, %arg5: memref<1x64xf32, #tpu.memory_space<vmem>>, %arg6: memref<64x32xbf16, #tpu.memory_space<vmem>>, %arg7: memref<1x32xf32, #tpu.memory_space<vmem>>, %arg8: memref<32x3xbf16, #tpu.memory_space<vmem>>, %arg9: memref<1x3xf32, #tpu.memory_space<vmem>>, %arg10: memref<16x3xf32, #tpu.memory_space<vmem>>) attributes {dimension_semantics = [#tpu.dimension_semantics<parallel>], iteration_bounds = array<i64: 1>, scalar_prefetch = 0 : i64, scratch_operands = 0 : i64, tpu.core_type = #tpu.core_type<tc>, window_params = [{transform_indices = @transform_0, window_bounds = array<i64: 16, 187>}, {pipeline_mode = #tpu.pipeline_mode<synchronous>, transform_indices = @transform_1, window_bounds = array<i64: 187, 256>}, {pipeline_mode = #tpu.pipeline_mode<synchronous>, transform_indices = @transform_2, window_bounds = array<i64: 1, 256>}, {pipeline_mode = #tpu.pipeline_mode<synchronous>, transform_indices = @transform_3, window_bounds = array<i64: 256, 64>}, {pipeline_mode = #tpu.pipeline_mode<synchronous>, transform_indices = @transform_4, window_bounds = array<i64: 1, 64>}, {pipeline_mode = #tpu.pipeline_mode<synchronous>, transform_indices = @transform_5, window_bounds = array<i64: 64, 32>}, {pipeline_mode = #tpu.pipeline_mode<synchronous>, transform_indices = @transform_6, window_bounds = array<i64: 1, 32>}, {pipeline_mode = #tpu.pipeline_mode<synchronous>, transform_indices = @transform_7, window_bounds = array<i64: 32, 3>}, {pipeline_mode = #tpu.pipeline_mode<synchronous>, transform_indices = @transform_8, window_bounds = array<i64: 1, 3>}, {transform_indices = @transform_9, window_bounds = array<i64: 16, 3>}]} {
    %c0 = arith.constant 0 : index
    %c0_0 = arith.constant 0 : index
    %0 = vector.load %arg1[%c0, %c0_0] : memref<16x187xf32, #tpu.memory_space<vmem>>, vector<16x187xf32>
    %1 = arith.truncf %0 : vector<16x187xf32> to vector<16x187xbf16>
    %c0_1 = arith.constant 0 : index
    %c0_2 = arith.constant 0 : index
    %2 = vector.load %arg2[%c0_1, %c0_2] : memref<187x256xbf16, #tpu.memory_space<vmem>>, vector<187x256xbf16>
    %cst = arith.constant dense<0.000000e+00> : vector<16x256xf32>
    %3 = tpu.matmul %1, %2, %cst {dimension_numbers = #tpu.dot_dimension_numbers<[1], [0], [0], [1], [0, 0, 1, 1], [], []>} : vector<16x187xbf16>, vector<187x256xbf16>, vector<16x256xf32> -> vector<16x256xf32>
    %c0_3 = arith.constant 0 : index
    %c0_4 = arith.constant 0 : index
    %4 = vector.load %arg3[%c0_3, %c0_4] : memref<1x256xf32, #tpu.memory_space<vmem>>, vector<1x256xf32>
    %5 = vector.broadcast %4 : vector<1x256xf32> to vector<16x256xf32>
    %6 = arith.addf %3, %5 : vector<16x256xf32>
    %cst_5 = arith.constant 0.000000e+00 : f32
    %7 = vector.broadcast %cst_5 : f32 to vector<16x256xf32>
    %8 = arith.maximumf %6, %7 : vector<16x256xf32>
    %9 = arith.truncf %8 : vector<16x256xf32> to vector<16x256xbf16>
    %c0_6 = arith.constant 0 : index
    %c0_7 = arith.constant 0 : index
    %10 = vector.load %arg4[%c0_6, %c0_7] : memref<256x64xbf16, #tpu.memory_space<vmem>>, vector<256x64xbf16>
    %cst_8 = arith.constant dense<0.000000e+00> : vector<16x64xf32>
    %11 = tpu.matmul %9, %10, %cst_8 {dimension_numbers = #tpu.dot_dimension_numbers<[1], [0], [0], [1], [0, 0, 1, 1], [], []>} : vector<16x256xbf16>, vector<256x64xbf16>, vector<16x64xf32> -> vector<16x64xf32>
    %c0_9 = arith.constant 0 : index
    %c0_10 = arith.constant 0 : index
    %12 = vector.load %arg5[%c0_9, %c0_10] : memref<1x64xf32, #tpu.memory_space<vmem>>, vector<1x64xf32>
    %13 = vector.broadcast %12 : vector<1x64xf32> to vector<16x64xf32>
    %14 = arith.addf %11, %13 : vector<16x64xf32>
    %cst_11 = arith.constant 0.000000e+00 : f32
    %15 = vector.broadcast %cst_11 : f32 to vector<16x64xf32>
    %16 = arith.maximumf %14, %15 : vector<16x64xf32>
    %17 = arith.truncf %16 : vector<16x64xf32> to vector<16x64xbf16>
    %c0_12 = arith.constant 0 : index
    %c0_13 = arith.constant 0 : index
    %18 = vector.load %arg6[%c0_12, %c0_13] : memref<64x32xbf16, #tpu.memory_space<vmem>>, vector<64x32xbf16>
    %cst_14 = arith.constant dense<0.000000e+00> : vector<16x32xf32>
    %19 = tpu.matmul %17, %18, %cst_14 {dimension_numbers = #tpu.dot_dimension_numbers<[1], [0], [0], [1], [0, 0, 1, 1], [], []>} : vector<16x64xbf16>, vector<64x32xbf16>, vector<16x32xf32> -> vector<16x32xf32>
    %c0_15 = arith.constant 0 : index
    %c0_16 = arith.constant 0 : index
    %20 = vector.load %arg7[%c0_15, %c0_16] : memref<1x32xf32, #tpu.memory_space<vmem>>, vector<1x32xf32>
    %21 = vector.broadcast %20 : vector<1x32xf32> to vector<16x32xf32>
    %22 = arith.addf %19, %21 : vector<16x32xf32>
    %cst_17 = arith.constant 0.000000e+00 : f32
    %23 = vector.broadcast %cst_17 : f32 to vector<16x32xf32>
    %24 = arith.maximumf %22, %23 : vector<16x32xf32>
    %25 = arith.truncf %24 : vector<16x32xf32> to vector<16x32xbf16>
    %c0_18 = arith.constant 0 : index
    %c0_19 = arith.constant 0 : index
    %26 = vector.load %arg8[%c0_18, %c0_19] : memref<32x3xbf16, #tpu.memory_space<vmem>>, vector<32x3xbf16>
    %cst_20 = arith.constant dense<0.000000e+00> : vector<16x3xf32>
    %27 = tpu.matmul %25, %26, %cst_20 {dimension_numbers = #tpu.dot_dimension_numbers<[1], [0], [0], [1], [0, 0, 1, 1], [], []>} : vector<16x32xbf16>, vector<32x3xbf16>, vector<16x3xf32> -> vector<16x3xf32>
    %c0_21 = arith.constant 0 : index
    %c0_22 = arith.constant 0 : index
    %28 = vector.load %arg9[%c0_21, %c0_22] : memref<1x3xf32, #tpu.memory_space<vmem>>, vector<1x3xf32>
    %29 = vector.broadcast %28 : vector<1x3xf32> to vector<16x3xf32>
    %30 = arith.addf %27, %29 : vector<16x3xf32>
    %c0_23 = arith.constant 0 : index
    %c0_24 = arith.constant 0 : index
    %31 = vector.load %arg10[%c0_23, %c0_24] : memref<16x3xf32, #tpu.memory_space<vmem>>, vector<16x3xf32>
    tpu.vector_store %arg10[%c0_23, %c0_24], %30 {strides = array<i32>} : memref<16x3xf32, #tpu.memory_space<vmem>>, vector<16x3xf32>,
    return
  }
  func.func @transform_0(%arg0: i32) -> (i32, i32) {
    %c0_i32 = arith.constant 0 : i32
    %c0_i32_0 = arith.constant 0 : i32
    return %arg0, %c0_i32 : i32, i32
  }
  func.func @transform_1(%arg0: i32) -> (i32, i32) {
    %c0_i32 = arith.constant 0 : i32
    %c0_i32_0 = arith.constant 0 : i32
    %c0_i32_1 = arith.constant 0 : i32
    return %c0_i32, %c0_i32_0 : i32, i32
  }
  func.func @transform_2(%arg0: i32) -> (i32, i32) {
    %c0_i32 = arith.constant 0 : i32
    %c0_i32_0 = arith.constant 0 : i32
    %c0_i32_1 = arith.constant 0 : i32
    return %c0_i32, %c0_i32_0 : i32, i32
  }
  func.func @transform_3(%arg0: i32) -> (i32, i32) {
    %c0_i32 = arith.constant 0 : i32
    %c0_i32_0 = arith.constant 0 : i32
    %c0_i32_1 = arith.constant 0 : i32
    return %c0_i32, %c0_i32_0 : i32, i32
  }
  func.func @transform_4(%arg0: i32) -> (i32, i32) {
    %c0_i32 = arith.constant 0 : i32
    %c0_i32_0 = arith.constant 0 : i32
    %c0_i32_1 = arith.constant 0 : i32
    return %c0_i32, %c0_i32_0 : i32, i32
  }
  func.func @transform_5(%arg0: i32) -> (i32, i32) {
    %c0_i32 = arith.constant 0 : i32
    %c0_i32_0 = arith.constant 0 : i32
    %c0_i32_1 = arith.constant 0 : i32
    return %c0_i32, %c0_i32_0 : i32, i32
  }
  func.func @transform_6(%arg0: i32) -> (i32, i32) {
    %c0_i32 = arith.constant 0 : i32
    %c0_i32_0 = arith.constant 0 : i32
    %c0_i32_1 = arith.constant 0 : i32
    return %c0_i32, %c0_i32_0 : i32, i32
  }
  func.func @transform_7(%arg0: i32) -> (i32, i32) {
    %c0_i32 = arith.constant 0 : i32
    %c0_i32_0 = arith.constant 0 : i32
    %c0_i32_1 = arith.constant 0 : i32
    return %c0_i32, %c0_i32_0 : i32, i32
  }
  func.func @transform_8(%arg0: i32) -> (i32, i32) {
    %c0_i32 = arith.constant 0 : i32
    %c0_i32_0 = arith.constant 0 : i32
    %c0_i32_1 = arith.constant 0 : i32
    return %c0_i32, %c0_i32_0 : i32, i32
  }
  func.func @transform_9(%arg0: i32) -> (i32, i32) {
    %c0_i32 = arith.constant 0 : i32
    %c0_i32_0 = arith.constant 0 : i32
    return %arg0, %c0_i32 : i32, i32
  }
}

</mosaic_0001>

<bundles_post_ra>
// kernel: tpu_custom_call.1
= control target key start
LH: loop header
LB: loop body
LE: loop exit
PB: predicated region body
PF: predicated region fallthrough
CT: control target
= control target key end

     0   :  { %14 = vsyncpa [#allocation3], 0  ;;  %s1076_s0 = inlined_call_operand.hbm [shape: f32[16,187], index: 0, kind: input, shape index: {}]   ;;  %s1077_s1 = inlined_call_operand.vmem [shape: bf16[187,256], index: 1, kind: input, shape index: {}]   ;;  %s1078_s2 = inlined_call_operand.hbm [shape: f32[1,256], index: 2, kind: input, shape index: {}]   ;;  %s1079_s3 = inlined_call_operand.vmem [shape: bf16[256,64], index: 3, kind: input, shape index: {}]   ;;  %s1080_s4 = inlined_call_operand.vmem [shape: f32[1,64], index: 4, kind: input, shape index: {}]   ;;  %s1081_s5 = inlined_call_operand.vmem [shape: bf16[64,32], index: 5, kind: input, shape index: {}]   ;;  %s1082_s6 = inlined_call_operand.vmem [shape: f32[1,32], index: 6, kind: input, shape index: {}]   ;;  %s1083_s7 = inlined_call_operand.vmem [shape: bf16[32,3], index: 7, kind: input, shape index: {}]   ;;  %s1084_s8 = inlined_call_operand.vmem [shape: f32[1,3], index: 8, kind: input, shape index: {}]   ;;  %s1085_s9 = inlined_call_operand.vmem [shape: f32[16,3], index: 9, kind: output, shape index: {}]  }
   0x1   :  { %15 = vsyncpa [#allocation5], 0  ;;  %s840_s30 = smov [#allocation2]   ;;  %s792_s13 = scalar_lea.hbm %s1076_s0, 512 }
   0x2   :  { %s21_s10 = sshll.u32 %s840_s30, 4  ;;  %p793_p0 = scmp.ne.s32.totalorder %s1076_s0, %s792_s13  ;;  %s22_s10 = int_to_ptr.vmem [resolvable:$true] %s21_s10 }
   0x3   :  { %p796_p1 = scmp.lt.u32.totalorder %s792_s13, %s1076_s0 }
   0x5   :  { %p798_p2 = pnand %p796_p1, %p793_p0 }
   0x7   :  { %801 = shalt.err (!%p798_p2)
}
   0x8   :  { %s802_s18 = scalar_lea.vmem %s22_s10, 512  ;;  %p807_p4 = scmp.lt.s32.totalorder %s22_s10, %s22_s10 }
   0x9   :  { %p803_p3 = scmp.ne.s32.totalorder %s22_s10, %s802_s18  ;;  %p808_p5 = scmp.lt.s32.totalorder %s802_s18, %s802_s18 }
   0xb   :  { %p809_p6 = por %p808_p5, %p807_p4 }
   0xd   :  { %p810_p7 = pnand %p809_p6, %p803_p3 }
   0xf   :  { %813 = shalt.err (!%p810_p7)
}
  0x10   :  { %s841_s19 = smov 256   ;;  %s842_s20 = smov 16  }
  0x11   :  { %27 = dma.hbm_to_vmem [thread:$0]  %s1076_s0, 512, %s22_s10, [#allocation3], %s841_s19, %s841_s19, %s842_s20  }
  0x12   :  { %s843_s23 = smov [#allocation4]   ;;  %s814_s27 = scalar_lea.hbm %s1078_s2, 32 }
  0x13   :  { %s36_s24 = sshll.u32 %s843_s23, 4  ;;  %p815_p8 = scmp.ne.s32.totalorder %s1078_s2, %s814_s27  ;;  %s37_s24 = int_to_ptr.vmem [resolvable:$true] %s36_s24 }
  0x14   :  { %p818_p9 = scmp.lt.u32.totalorder %s814_s27, %s1078_s2 }
  0x16   :  { %p820_p10 = pnand %p818_p9, %p815_p8 }
  0x18   :  { %823 = shalt.err (!%p820_p10)
}
  0x19   :  { %s824_s12 = scalar_lea.vmem %s37_s24, 32  ;;  %p829_p12 = scmp.lt.s32.totalorder %s37_s24, %s37_s24 }
  0x1a   :  { %p825_p11 = scmp.ne.s32.totalorder %s37_s24, %s824_s12  ;;  %p830_p13 = scmp.lt.s32.totalorder %s824_s12, %s824_s12 }
  0x1c   :  { %p831_p0 = por %p830_p13, %p829_p12 }
  0x1e   :  { %p832_p1 = pnand %p831_p0, %p825_p11 }
  0x20   :  { %835 = shalt.err (!%p832_p1)
}
  0x21   :  { %39 = dma.hbm_to_vmem [thread:$0]  %s1078_s2, 32, %s37_s24, [#allocation5]  }
  0x22   :  { %836 = dma.done.wait [#allocation3], 512  }
  0x23   :  { %837 = vsyncadd [#allocation3], 4294966784 }
  0x24   :  { %838 = dma.done.wait [#allocation5], 32  }
  0x25   :  { %839 = vsyncadd [#allocation5], 4294967264  ;;  %v734_v0 = vld [vmem:[%s1077_s1 + $0x4] ss:$8 sps:$4 sm:$0xff]   ;;  %v736_v1 = vld [vmem:[%s1077_s1] ss:$8 sps:$4 sm:$0xff]   ;;  %v91_v52 = vlaneseq }
  0x26   :  { %233 = vmatprep.subr.bf16.mxu0 %v734_v0  ;;  %v737_v2 = vld [vmem:[%s1077_s1 + $0x14] ss:$8 sps:$4 sm:$0xff]   ;;  %v739_v3 = vld [vmem:[%s1077_s1 + $0x10] ss:$8 sps:$4 sm:$0xff]   ;;  %v740_v4 = vld [vmem:[%s1077_s1 + $0x24] ss:$8 sps:$4 sm:$0xff]  }
  0x27   :  { %234 = vmatpush1.bf16.msra.mxu0 %v736_v1  ;;  %v742_v5 = vld [vmem:[%s1077_s1 + $0x20] ss:$8 sps:$4 sm:$0xff]   ;;  %v743_v6 = vld [vmem:[%s1077_s1 + $0x34] ss:$8 sps:$4 sm:$0xff]   ;;  %v745_v7 = vld [vmem:[%s1077_s1 + $0x30] ss:$8 sps:$4 sm:$0xff]  }
  0x28   :  { %235 = vmatprep.subr.bf16.mxu0 %v737_v2  ;;  %v746_v8 = vld [vmem:[%s1077_s1 + $0x44] ss:$8 sps:$4 sm:$0xff]   ;;  %v748_v9 = vld [vmem:[%s1077_s1 + $0x40] ss:$8 sps:$4 sm:$0xff]   ;;  %v749_v11 = vld [vmem:[%s1077_s1 + $0x54] ss:$8 sps:$4 sm:$0xff]  }
  0x29   :  { %v60_v10 = vld [vmem:[#allocation2 + $0x8] sm:$0xff]  ;;  %v62_v12 = vld [vmem:[#allocation2 + $0x18] sm:$0xff]  ;;  %vm219_vm0 = vcmask 482304   ;;  %v770_v16 = vld [vmem:[%s1079_s3 + $0x40] sm:$0xff]   ;;  %vm223_vm1 = vcmask 1044480   ;;  %vm224_vm2 = vcmask 1045504  }
  0x2a   :  { %v751_v13 = vld [vmem:[%s1077_s1 + $0x50] ss:$8 sps:$4 sm:$0xff]   ;;  %v64_v14 = vpack.c.bf16 %v62_v12, %v60_v10  ;;  %v752_v15 = vld [vmem:[%s1077_s1 + $0x64] ss:$8 sps:$4 sm:$0xff]   ;;  %677 = vmatprep.subr.bf16.mxu1 %v770_v16  ;;  %v754_v21 = vld [vmem:[%s1077_s1 + $0x60] ss:$8 sps:$4 sm:$0xff]  }
  0x2b   :  { %236 = vmatpush1.bf16.msra.mxu0 %v739_v3  ;;  %v771_v17 = vld [vmem:[%s1079_s3] sm:$0xff]   ;;  %v772_v18 = vld [vmem:[%s1079_s3 + $0x48] sm:$0xff]   ;;  %v774_v20 = vld [vmem:[%s1079_s3 + $0x50] sm:$0xff]   ;;  %v844_v27 = vmov 65535   ;;  %v845_v51 = vmov 0.0   ;;  %v92_v53 = vshrl.u32 %v91_v52, 7 }
  0x2c   :  { %237 = vmatprep.subr.bf16.mxu0 %v740_v4  ;;  %649 = vmatprep.mubr.msk.bf16.mxu0 %vm219_vm0, %v64_v14  ;;  %v773_v19 = vld [vmem:[%s1079_s3 + $0x8] sm:$0xff]   ;;  %v755_v22 = vld [vmem:[%s1077_s1 + $0x74] ss:$8 sps:$4 sm:$0xff]   ;;  %v757_v23 = vld [vmem:[%s1077_s1 + $0x70] ss:$8 sps:$4 sm:$0xff]   ;;  %v225_v28 = vsel %vm223_vm1, 4294967295, %v844_v27 }
  0x2d   :  { %678 = vmatpush3.bf16.msra.mxu1 %v771_v17  ;;  %v775_v24 = vld [vmem:[%s1079_s3 + $0x10] sm:$0xff]   ;;  %v776_v25 = vld [vmem:[%s1079_s3 + $0x58] sm:$0xff]   ;;  %v758_v26 = vld [vmem:[%s1077_s1 + $0x84] ss:$8 sps:$4 sm:$0xff]   ;;  %v226_v38 = vsel %vm224_vm2, %v225_v28, 0  ;;  %v93_v54 = vsub.s32 0, %v92_v53 }
  0x2e   :  { %679 = vmatprep.subr.bf16.mxu1 %v772_v18  ;;  %v777_v29 = vld [vmem:[%s1079_s3 + $0x18] sm:$0xff]   ;;  %v778_v30 = vld [vmem:[%s1079_s3 + $0x60] sm:$0xff]   ;;  %v780_v34 = vld [vmem:[%s1079_s3 + $0x68] sm:$0xff]   ;;  %v97_v56 = vsub.s32 1, %v92_v53  ;;  %vm846_vm3 = vmmov 0   ;;  %vm500_vm4 = vcmask 523264  }
  0x2f   :  { %238 = vmatpush1.bf16.msra.mxu0 %v742_v5  ;;  %v760_v31 = vld [vmem:[%s1077_s1 + $0x80] ss:$8 sps:$4 sm:$0xff]   ;;  %v761_v32 = vld [vmem:[%s1077_s1 + $0x94] ss:$8 sps:$4 sm:$0xff]   ;;  %v763_v35 = vld [vmem:[%s1077_s1 + $0x90] ss:$8 sps:$4 sm:$0xff]  }
  0x30   :  { %239 = vmatprep.subr.bf16.mxu0 %v743_v6  ;;  %v779_v33 = vld [vmem:[%s1079_s3 + $0x20] sm:$0xff]   ;;  %v767_v37 = vld [vmem:[%s1077_s1 + $0xb4] ss:$8 sps:$4 sm:$0x3f]   ;;  %v781_v46 = vld [vmem:[%s1079_s3 + $0x28] sm:$0xff]   ;;  %vm571_vm5 = vcmask 261120  }
  0x31   :  { %680 = vmatpush3.bf16.msra.mxu1 %v773_v19  ;;  %v764_v36 = vld [vmem:[%s1077_s1 + $0xa4] ss:$8 sps:$4 sm:$0xff]   ;;  %v766_v39 = vld [vmem:[%s1077_s1 + $0xa0] ss:$8 sps:$4 sm:$0xff]   ;;  %v231_v41 = vand.u32 %v767_v37, %v226_v38  ;;  %v61_v44 = vld [vmem:[#allocation2 + $0x10] sm:$0xff]  ;;  %vm616_vm6 = vcmask 23552  }
  0x32   :  { %681 = vmatprep.subr.bf16.mxu1 %v774_v20  ;;  %v769_v40 = vld [vmem:[%s1077_s1 + $0xb0] ss:$8 sps:$4 sm:$0x3f]   ;;  %v59_v43 = vld [vmem:[#allocation2] sm:$0xff]  ;;  %v787_v10 = vld [vmem:[%s1081_s5 + $0x8] sm:$0xff]  }
  0x33   :  { %240 = vmatpush1.bf16.msra.mxu0 %v745_v7  ;;  %v228_v42 = vand.u32 %v769_v40, %v226_v38  ;;  %v63_v45 = vpack.c.bf16 %v61_v44, %v59_v43  ;;  %v782_v47 = vld [vmem:[%s1079_s3 + $0x70] sm:$0xff]   ;;  %v784_v49 = vld [vmem:[%s1079_s3 + $0x78] sm:$0xff]   ;;  %v89_v55 = vld [vmem:[#allocation4] sm:$0x3] }
  0x34   :  { %241 = vmatprep.subr.bf16.mxu0 %v746_v8  ;;  %v783_v48 = vld [vmem:[%s1079_s3 + $0x30] sm:$0xff]   ;;  %v785_v50 = vld [vmem:[%s1079_s3 + $0x38] sm:$0xff]   ;;  %v94_v57 = vrot.slane %v89_v55, %v93_v54  ;;  %v98_v58 = vrot.slane %v89_v55, %v97_v56  ;;  %v650_v14 = vld [vmem:[%s1080_s4] ss:$0 sm:$0xff] }
  0x35   :  { %682 = vmatpush3.bf16.msra.mxu1 %v775_v24  ;;  %v789_v12 = vld [vmem:[%s1081_s5 + $0x18] sm:$0xff]   ;;  %v667_v27 = vld [vmem:[%s1082_s6] ss:$0 sm:$0xff] }
  0x36   :  { %683 = vmatprep.subr.bf16.mxu1 %v776_v25  ;;  %v790_v25 = vld [vmem:[%s1083_s7] sm:$0xff]  }
  0x37   :  { %242 = vmatpush1.bf16.msra.mxu0 %v748_v9  ;;  %v786_v9 = vld [vmem:[%s1081_s5] sm:$0xff]  }
  0x38   :  { %243 = vmatprep.subr.bf16.mxu0 %v749_v11  ;;  %v788_v11 = vld [vmem:[%s1081_s5 + $0x10] sm:$0xff]   ;;  %v673_v37 = vld [vmem:[%s1084_s8] ss:$0 sm:$0xff] }
  0x39   :  { %684 = vmatpush3.bf16.msra.mxu1 %v777_v29 }
  0x3a   :  { %685 = vmatprep.subr.bf16.mxu1 %v778_v30 }
  0x3b   :  { %244 = vmatpush1.bf16.msra.mxu0 %v751_v13 }
  0x3c   :  { %245 = vmatprep.subr.bf16.mxu0 %v752_v15 }
  0x3d   :  { %686 = vmatpush3.bf16.msra.mxu1 %v779_v33 }
  0x3e   :  { %687 = vmatprep.subr.bf16.mxu1 %v780_v34 }
  0x3f   :  { %246 = vmatpush1.bf16.msra.mxu0 %v754_v21 }
  0x40   :  { %247 = vmatprep.subr.bf16.mxu0 %v755_v22 }
  0x41   :  { %688 = vmatpush3.bf16.msra.mxu1 %v781_v46 }
  0x42   :  { %689 = vmatprep.subr.bf16.mxu1 %v782_v47 }
  0x43   :  { %248 = vmatpush1.bf16.msra.mxu0 %v757_v23 }
  0x44   :  { %249 = vmatprep.subr.bf16.mxu0 %v758_v26  ;;  %v791_v26 = vld [vmem:[%s1083_s7 + $0x8] sm:$0xff]  }
  0x45   :  { %690 = vmatpush3.bf16.msra.mxu1 %v783_v48 }
  0x46   :  { %691 = vmatprep.subr.bf16.mxu1 %v784_v49 }
  0x47   :  { %250 = vmatpush1.bf16.msra.mxu0 %v760_v31 }
  0x48   :  { %251 = vmatprep.subr.bf16.mxu0 %v761_v32 }
  0x49   :  { %692 = vmatpush3.bf16.msra.mxu1 %v785_v50 }
  0x4a   :  { %707 = vmatprep.subr.bf16.mxu1 %v845_v51 }
  0x4b   :  { %252 = vmatpush1.bf16.msra.mxu0 %v763_v35 }
  0x4c   :  { %253 = vmatprep.subr.bf16.mxu0 %v764_v36 }
  0x4f   :  { %254 = vmatpush1.bf16.msra.mxu0 %v766_v39 }
  0x50   :  { %255 = vmatprep.subr.bf16.mxu0 %v231_v41 }
  0x53   :  { %256 = vmatpush1.bf16.msra.mxu0 %v228_v42 }
  0x54   :  { %719 = vmatprep.subr.bf16.mxu0 %v845_v51 }
  0x56   :  { %266 = vmatmul.mubr.bf16.vlgmr.msra.gmra.mrb[0].mxu0 %v63_v45 }
  0x57   :  { %723 = vmatprep.mubr.msk.bf16.mxu0 %vm846_vm3, %v845_v51  ;;  %720 = vmatpush3.bf16.msra.mxu0 %v790_v25 }
  0x58   :  { %721 = vmatprep.subr.bf16.mxu0 %v845_v51 }
  0x5b   :  { %722 = vmatpush3.bf16.msra.mxu0 %v791_v26 }
 0x129   :  { %v267_v59 = vpop.f32.mrb[0].mxu0 }
 0x12a   :  { %v268_v60 = vadd.f32 %v267_v59, %v94_v57  ;;  %v269_v61 = vpop.f32.mrb[1].mxu0 }
 0x12b   :  { %v270_v62 = vadd.f32 %v269_v61, %v98_v58  ;;  %v271_v63 = vpop.f32.mrb[2].mxu0 }
 0x12c   :  { %v272_v0 = vadd.f32 %v271_v63, %v94_v57  ;;  %v273_v1 = vpop.f32.mrb[3].mxu0  ;;  %v276_v3 = vmax.f32 %v268_v60, 0.0 }
 0x12d   :  { %v274_v2 = vadd.f32 %v273_v1, %v98_v58  ;;  %v277_v5 = vmax.f32 %v270_v62, 0.0 }
 0x12e   :  { %v278_v4 = vmax.f32 %v272_v0, 0.0 }
 0x12f   :  { %v279_v6 = vmax.f32 %v274_v2, 0.0 }
 0x130   :  { %v280_v7 = vpack.c.bf16 %v278_v4, %v276_v3 }
 0x131   :  { %v281_v8 = vpack.c.bf16 %v279_v6, %v277_v5 }
 0x133   :  { %449 = vmatprep.mubr.bf16.mxu1 %v281_v8 }
 0x134   :  { %450 = vmatmul.mubr.bf16.vlgmr.msra.gmra.mrb[0].mxu1 %v280_v7 }
 0x135   :  { %708 = vmatpush3.bf16.msra.mxu1 %v786_v9  ;;  %715 = vmatprep.mubr.msk.bf16.mxu1 %vm846_vm3, %v845_v51 }
 0x136   :  { %709 = vmatprep.subr.bf16.mxu1 %v845_v51 }
 0x139   :  { %710 = vmatpush3.bf16.msra.mxu1 %v787_v10 }
 0x13a   :  { %711 = vmatprep.subr.bf16.mxu1 %v845_v51 }
 0x13d   :  { %712 = vmatpush3.bf16.msra.mxu1 %v788_v11 }
 0x13e   :  { %713 = vmatprep.subr.bf16.mxu1 %v845_v51 }
 0x141   :  { %714 = vmatpush3.bf16.msra.mxu1 %v789_v12 }
 0x207   :  { %v693_v13 = vpop.f32.mrb[0].mxu1 }
 0x208   :  { %v694_v15 = vpop.f32.mrb[1].mxu1 }
 0x209   :  { %v695_v16 = vadd.f32 %v694_v15, %v693_v13  ;;  %v696_v17 = vpop.f32.mrb[2].mxu1 }
 0x20a   :  { %v697_v18 = vpop.f32.mrb[3].mxu1 }
 0x20b   :  { %v452_v19 = vadd.f32 %v695_v16, %v650_v14  ;;  %v698_v20 = vadd.f32 %v697_v18, %v696_v17 }
 0x20d   :  { %v455_v21 = vadd.f32 %v698_v20, %v650_v14  ;;  %v458_v22 = vmax.f32 %v452_v19, 0.0 }
 0x20f   :  { %v459_v23 = vmax.f32 %v455_v21, 0.0 }
 0x211   :  { %v460_v24 = vpack.c.bf16 %v459_v23, %v458_v22 }
 0x213   :  { %716 = vmatmul.mubr.msk.bf16.vlgmr.msra.gmra.mrb[4].mxu1 %vm500_vm4, %v460_v24 }
 0x2e6   :  { %v538_v28 = vpop.f32.mrb[4].mxu1 }
 0x2e7   :  { %v539_v29 = vadd.f32 %v667_v27, %v538_v28  ;;  %v717_v30 = vpop.f32.mrb[5].mxu1 }
 0x2e8   :  { %v541_v31 = vpop.f32.mrb[6].mxu1 }
 0x2e9   :  { %v542_v32 = vadd.f32 %v667_v27, %v541_v31  ;;  %v718_v33 = vpop.f32.mrb[7].mxu1  ;;  %v545_v34 = vmax.f32 %v539_v29, 0.0 }
 0x2eb   :  { %v546_v35 = vmax.f32 %v542_v32, 0.0 }
 0x2ed   :  { %v547_v36 = vpack.c.bf16 %v546_v35, %v545_v34 }
 0x2ef   :  { %724 = vmatmul.mubr.msk.bf16.vlgmr.msra.gmra.mrb[4].mxu0 %vm571_vm5, %v547_v36 }
 0x3c2   :  { %v609_v38 = vpop.f32.mrb[4].mxu0 }
 0x3c3   :  { %v610_v39 = vadd.f32 %v673_v37, %v609_v38  ;;  %v725_v40 = vpop.f32.mrb[5].mxu0 }
 0x3c4   :  { %v612_v41 = vpop.f32.mrb[6].mxu0 }
 0x3c5   :  { %617 = vst.msk [vmem:[%s1085_s9] sm:$0xff] %vm616_vm6, %v610_v39  ;;  %v613_v42 = vadd.f32 %v673_v37, %v612_v41  ;;  %v726_v43 = vpop.f32.mrb[7].mxu0 }
 0x3c7   :  { %618 = vst.msk [vmem:[%s1085_s9 + $0x8] sm:$0xff] %vm616_vm6, %v613_v42 }
 0x3c8   :  { %623 = vsyncpa [#allocation3], 1 }
 0x3c9   :  { %624 = vsyncpa [#allocation5], 1 }

</bundles_post_ra>
